<compile_context>
chip_gen: v6e
topology: v6e:2x2x1
jax: 0.10.0
libtpu: 0.0.40
codegen_flags: <defaults>
</compile_context>

<pallas_src>
import jax
import jax.numpy as jnp
from jax.experimental import pallas as pl
from jax.experimental.pallas import tpu as pltpu


def _controller_kernel(x_ref, w_ref, b_ref, o_ref):
    # x_ref : (TM, P*H)   lane-packed activations (P original rows per packed row)
    # w_ref : (P*H, P)    block-diagonal fused weight W1 @ W2
    # b_ref : (1, 1)      fused bias (SMEM scalar)
    # o_ref : (TM, P)     softplus(x @ W + b), one column per packed original row
    y = jnp.dot(x_ref[...], w_ref[...], preferred_element_type=jnp.float32)
    y = y + b_ref[0, 0]
    # Numerically stable softplus: max(y, 0) + log1p(exp(-|y|))
    margin = jnp.maximum(y, 0.0) + jnp.log1p(jnp.exp(-jnp.abs(y)))
    o_ref[...] = margin.astype(o_ref.dtype)


def controller_forward(x, w1, b1, w2, b2, *, block_rows=1024):
    """x: (B, H) f32; w1: (H, 20); b1: (1, 20); w2: (20, 1); b2: (1, 1).

    Returns (B, 1) f32 = softplus((x @ w1 + b1) @ w2 + b2).
    """
    B, H = x.shape
    dtype = jnp.float32

    # --- algebraic fusion of the two affine layers (no inter-layer nonlinearity) ---
    w_f = jnp.dot(w1.astype(dtype), w2.astype(dtype))                 # (H, 1)
    b_f = (jnp.dot(b1.astype(dtype), w2.astype(dtype)) + b2).reshape(1, 1)  # (1, 1)

    # --- lane packing: pack P original rows into one 128-lane row ---
    P = 128 // H if (128 % H == 0) else 1
    lanes = P * H

    # pad batch so it packs into an integer number of (TM)-row blocks
    rows = -(-B // P)                       # packed rows needed
    rows_aligned = ((rows + 7) // 8) * 8    # sublane alignment
    tm = min(((block_rows + 7) // 8) * 8, rows_aligned)
    rows_p = ((rows_aligned + tm - 1) // tm) * tm
    nb = rows_p // tm

    total_rows = rows_p * P
    pad_batch = total_rows - B
    x_p = jnp.pad(x.astype(dtype), ((0, pad_batch), (0, 0))) if pad_batch else x.astype(dtype)
    x_packed = x_p.reshape(rows_p, lanes)   # contiguous view: row r = orig rows r*P..r*P+P-1

    # block-diagonal fused weight: column j holds w_f in lane range [j*H, (j+1)*H)
    w_bd = jnp.kron(jnp.eye(P, dtype=dtype), w_f)                     # (P*H, P)

    out = pl.pallas_call(
        _controller_kernel,
        out_shape=jax.ShapeDtypeStruct((rows_p, P), dtype),
        grid=(nb,),
        in_specs=[
            pl.BlockSpec((tm, lanes), lambda i: (i, 0)),              # x tiles (pipelined)
            pl.BlockSpec((lanes, P), lambda i: (0, 0)),               # fused weight (resident)
            pl.BlockSpec(memory_space=pltpu.MemorySpace.SMEM),        # fused bias scalar
        ],
        out_specs=pl.BlockSpec((tm, P), lambda i: (i, 0)),
        compiler_params=pltpu.CompilerParams(
            dimension_semantics=("parallel",),                        # megacore on v7x
        ),
    )(x_packed, w_bd, b_f)

    # Row-major flatten restores original batch order; drop padded rows.
    return out.reshape(-1)[:B].reshape(B, 1)


def init_controller_params(key, hidden_dim):
    """Deterministic synthetic init mirroring nn.Linear shapes.

    PyTorch stores weight as (out, in); we keep the transposed (in, out) form
    for the kernel's x @ W convention.
    """
    k1, k2, k3, k4 = jax.random.split(key, 4)
    bound1 = 1.0 / jnp.sqrt(hidden_dim)
    w1 = jax.random.uniform(k1, (hidden_dim, 20), jnp.float32, -bound1, bound1)
    b1 = jax.random.uniform(k2, (1, 20), jnp.float32, -bound1, bound1)
    bound2 = 1.0 / jnp.sqrt(20.0)
    w2 = jax.random.uniform(k3, (20, 1), jnp.float32, -bound2, bound2)
    b2 = jax.random.uniform(k4, (1, 1), jnp.float32, -bound2, bound2)
    return w1, b1, w2, b2


def controller_ref(x, w1, b1, w2, b2):
    z = x @ w1 + b1
    y = z @ w2 + b2
    return jax.nn.softplus(y)


if __name__ == "__main__":
    hidden_dim = 32
    batch = 8

    key = jax.random.PRNGKey(0)
    kx, kp = jax.random.split(key)
    x = jax.random.normal(kx, (batch, hidden_dim), jnp.float32)
    w1, b1, w2, b2 = init_controller_params(kp, hidden_dim)

    out = controller_forward(x, w1, b1, w2, b2)
    out = jax.block_until_ready(out)

    ref = controller_ref(x, w1, b1, w2, b2)
    assert out.shape == (batch, 1), out.shape
    assert jnp.allclose(out, ref, atol=1e-5, rtol=1e-5), (out, ref)

    print("KERNEL_OK")
</pallas_src>

<mosaic_0001>
module attributes {stable_mosaic.version = 11 : i64} {
  func.func @_controller_kernel(%arg0: i32, %arg1: memref<8x128xf32, #tpu.memory_space<vmem>>, %arg2: memref<128x4xf32, #tpu.memory_space<vmem>>, %arg3: memref<1x1xf32, #tpu.memory_space<smem>>, %arg4: memref<8x4xf32, #tpu.memory_space<vmem>>) attributes {dimension_semantics = [#tpu.dimension_semantics<parallel>], iteration_bounds = array<i64: 1>, scalar_prefetch = 0 : i64, scratch_operands = 0 : i64, tpu.core_type = #tpu.core_type<tc>, window_params = [{transform_indices = @transform_0, window_bounds = array<i64: 8, 128>}, {pipeline_mode = #tpu.pipeline_mode<synchronous>, transform_indices = @transform_1, window_bounds = array<i64: 128, 4>}, {transform_indices = @transform_2, window_bounds = array<i64: 1, 1>}, {transform_indices = @transform_3, window_bounds = array<i64: 8, 4>}]} {
    %c0 = arith.constant 0 : index
    %c0_0 = arith.constant 0 : index
    %0 = vector.load %arg1[%c0, %c0_0] : memref<8x128xf32, #tpu.memory_space<vmem>>, vector<8x128xf32>
    %c0_1 = arith.constant 0 : index
    %c0_2 = arith.constant 0 : index
    %1 = vector.load %arg2[%c0_1, %c0_2] : memref<128x4xf32, #tpu.memory_space<vmem>>, vector<128x4xf32>
    %cst = arith.constant dense<0.000000e+00> : vector<8x4xf32>
    %2 = tpu.matmul %0, %1, %cst {dimension_numbers = #tpu.dot_dimension_numbers<[1], [0], [0], [1], [0, 0, 1, 1], [], []>} : vector<8x128xf32>, vector<128x4xf32>, vector<8x4xf32> -> vector<8x4xf32>
    %c0_3 = arith.constant 0 : index
    %c0_4 = arith.constant 0 : index
    %3 = memref.load %arg3[%c0_3, %c0_4] : memref<1x1xf32, #tpu.memory_space<smem>>
    %4 = vector.broadcast %3 : f32 to vector<8x4xf32>
    %5 = arith.addf %2, %4 : vector<8x4xf32>
    %cst_5 = arith.constant 0.000000e+00 : f32
    %6 = vector.broadcast %cst_5 : f32 to vector<8x4xf32>
    %7 = arith.maximumf %5, %6 : vector<8x4xf32>
    %8 = math.absf %5 : vector<8x4xf32>
    %cst_6 = arith.constant 0.000000e+00 : f32
    %9 = vector.broadcast %cst_6 : f32 to vector<8x4xf32>
    %10 = arith.subf %9, %8 : vector<8x4xf32>
    %11 = math.exp %10 : vector<8x4xf32>
    %12 = math.log1p %11 : vector<8x4xf32>
    %13 = arith.addf %7, %12 : vector<8x4xf32>
    %c0_7 = arith.constant 0 : index
    %c0_8 = arith.constant 0 : index
    %14 = vector.load %arg4[%c0_7, %c0_8] : memref<8x4xf32, #tpu.memory_space<vmem>>, vector<8x4xf32>
    tpu.vector_store %arg4[%c0_7, %c0_8], %13 {strides = array<i32>} : memref<8x4xf32, #tpu.memory_space<vmem>>, vector<8x4xf32>,
    return
  }
  func.func @transform_0(%arg0: i32) -> (i32, i32) {
    %c0_i32 = arith.constant 0 : i32
    %c0_i32_0 = arith.constant 0 : i32
    return %arg0, %c0_i32 : i32, i32
  }
  func.func @transform_1(%arg0: i32) -> (i32, i32) {
    %c0_i32 = arith.constant 0 : i32
    %c0_i32_0 = arith.constant 0 : i32
    %c0_i32_1 = arith.constant 0 : i32
    return %c0_i32, %c0_i32_0 : i32, i32
  }
  func.func @transform_2(%arg0: i32) -> (i32, i32) {
    %c0_i32 = arith.constant 0 : i32
    %c0_i32_0 = arith.constant 0 : i32
    %c0_i32_1 = arith.constant 0 : i32
    return %c0_i32, %c0_i32_0 : i32, i32
  }
  func.func @transform_3(%arg0: i32) -> (i32, i32) {
    %c0_i32 = arith.constant 0 : i32
    %c0_i32_0 = arith.constant 0 : i32
    return %arg0, %c0_i32 : i32, i32
  }
}

</mosaic_0001>

<bundles_post_ra>
// kernel: tpu_custom_call.1
= control target key start
LH: loop header
LB: loop body
LE: loop exit
PB: predicated region body
PF: predicated region fallthrough
CT: control target
= control target key end

     0   :  { %v183_v0 = vmov 0.0   ;;  %vm184_vm0 = vmmov 0   ;;  %vm119_vm2 = vcmask 31744   ;;  %s262_s1 = inlined_call_operand.vmem [shape: f32[128,4], index: 1, kind: input, shape index: {}]   ;;  %s263_s0 = inlined_call_operand.vmem [shape: f32[8,128], index: 0, kind: input, shape index: {}]   ;;  %s264_s2 = inlined_call_operand.<no memory space> [shape: f32[1,1], index: 2, kind: input, shape index: {}]   ;;  %s265_s3 = inlined_call_operand.vmem [shape: f32[8,4], index: 3, kind: output, shape index: {}]  }
   0x1   :  { %142 = vmatprep.subr.mxu0 %v183_v0  ;;  %v31_v1 = vld [vmem:[%s262_s1 + $0x78] sm:$0xff]  ;;  %v30_v2 = vld [vmem:[%s262_s1 + $0x70] sm:$0xff]  ;;  %174 = vmatprep.mubr.msk.f32.mxu0 %vm184_vm0, %v183_v0  ;;  %v29_v3 = vld [vmem:[%s262_s1 + $0x68] sm:$0xff]  ;;  %v33_v18 = vstv %s264_s2 }
   0x2   :  { %143 = vmatpush3.msra.mxu0 %v31_v1  ;;  %v28_v4 = vld [vmem:[%s262_s1 + $0x60] sm:$0xff]  ;;  %v27_v5 = vld [vmem:[%s262_s1 + $0x58] sm:$0xff]  ;;  %v26_v6 = vld [vmem:[%s262_s1 + $0x50] sm:$0xff] }
   0x3   :  { %144 = vmatprep.subr.mxu0 %v183_v0  ;;  %v25_v7 = vld [vmem:[%s262_s1 + $0x48] sm:$0xff]  ;;  %v24_v8 = vld [vmem:[%s262_s1 + $0x40] sm:$0xff]  ;;  %v23_v9 = vld [vmem:[%s262_s1 + $0x38] sm:$0xff] }
   0x4   :  { %145 = vmatpush3.msra.mxu0 %v30_v2  ;;  %v22_v10 = vld [vmem:[%s262_s1 + $0x30] sm:$0xff]  ;;  %v21_v11 = vld [vmem:[%s262_s1 + $0x28] sm:$0xff]  ;;  %v20_v12 = vld [vmem:[%s262_s1 + $0x20] sm:$0xff] }
   0x5   :  { %146 = vmatprep.subr.mxu0 %v183_v0  ;;  %v19_v13 = vld [vmem:[%s262_s1 + $0x18] sm:$0xff]  ;;  %v18_v14 = vld [vmem:[%s262_s1 + $0x10] sm:$0xff]  ;;  %v17_v15 = vld [vmem:[%s262_s1 + $0x8] sm:$0xff] }
   0x6   :  { %147 = vmatpush3.msra.mxu0 %v29_v3  ;;  %v16_v16 = vld [vmem:[%s262_s1] sm:$0xff] }
   0x7   :  { %148 = vmatprep.subr.mxu0 %v183_v0  ;;  %v15_v17 = vld [vmem:[%s263_s0] sm:$0xff] }
   0x8   :  { %149 = vmatpush3.msra.mxu0 %v28_v4 }
   0x9   :  { %150 = vmatprep.subr.mxu0 %v183_v0 }
   0xa   :  { %151 = vmatpush3.msra.mxu0 %v27_v5 }
   0xb   :  { %152 = vmatprep.subr.mxu0 %v183_v0 }
   0xc   :  { %153 = vmatpush3.msra.mxu0 %v26_v6 }
   0xd   :  { %154 = vmatprep.subr.mxu0 %v183_v0 }
   0xe   :  { %155 = vmatpush3.msra.mxu0 %v25_v7 }
   0xf   :  { %156 = vmatprep.subr.mxu0 %v183_v0 }
  0x10   :  { %157 = vmatpush3.msra.mxu0 %v24_v8 }
  0x11   :  { %158 = vmatprep.subr.mxu0 %v183_v0 }
  0x12   :  { %159 = vmatpush3.msra.mxu0 %v23_v9 }
  0x13   :  { %160 = vmatprep.subr.mxu0 %v183_v0 }
  0x14   :  { %161 = vmatpush3.msra.mxu0 %v22_v10 }
  0x15   :  { %162 = vmatprep.subr.mxu0 %v183_v0 }
  0x16   :  { %163 = vmatpush3.msra.mxu0 %v21_v11 }
  0x17   :  { %164 = vmatprep.subr.mxu0 %v183_v0 }
  0x18   :  { %165 = vmatpush3.msra.mxu0 %v20_v12 }
  0x19   :  { %166 = vmatprep.subr.mxu0 %v183_v0 }
  0x1a   :  { %167 = vmatpush3.msra.mxu0 %v19_v13 }
  0x1b   :  { %168 = vmatprep.subr.mxu0 %v183_v0 }
  0x1c   :  { %169 = vmatpush3.msra.mxu0 %v18_v14 }
  0x1d   :  { %170 = vmatprep.subr.mxu0 %v183_v0 }
  0x1e   :  { %171 = vmatpush3.msra.mxu0 %v17_v15 }
  0x1f   :  { %172 = vmatprep.subr.mxu0 %v183_v0 }
  0x20   :  { %173 = vmatpush3.msra.mxu0 %v16_v16 }
  0x21   :  { %175 = vmatmul.mubr.f32.vlgmr.msra.gmra.mxu0 %v15_v17 }
  0xe1   :  { %v100_v19 = vpop.f32.mrf.mxu0 }
  0xe2   :  { %v101_v20 = vadd.f32 %v100_v19, %v33_v18 }
  0xe3   :  { %v176_v21 = vpop.f32.mrf.mxu0 }
  0xe4   :  { %v105_v22 = vand.u32 2147483647, %v101_v20  ;;  %v104_v33 = vmax.f32 %v101_v20, 0.0 }
  0xe6   :  { %v106_v23 = vsub.f32 0.0, %v105_v22 }
  0xe8   :  { %v107_v24 = vmul.f32 1.442695, %v106_v23 }
  0xea   :  { %179 = vpow2.f32 %v107_v24 }
  0xf7   :  { %v180_v25 = vpop.eup %179 }
  0xf8   :  { %v109_v26 = vadd.f32 1.0, %v180_v25  ;;  %v112_v27 = vmul.f32 -0.5, %v180_v25  ;;  %v115_v29 = vand.u32 2147483647, %v180_v25 }
  0xfa   :  { %181 = vlog2.f32 %v109_v26  ;;  %v113_v28 = vadd.f32 1.0, %v112_v27  ;;  %vm116_vm1 = vcmp.lt.f32.partialorder %v115_v29, 0.0004427343 }
  0xfc   :  { %v114_v32 = vmul.f32 %v180_v25, %v113_v28 }
 0x107   :  { %v182_v30 = vpop.eup %181 }
 0x108   :  { %v111_v31 = vmul.f32 0.6931472, %v182_v30 }
 0x10a   :  { %v117_v34 = vsel %vm116_vm1, %v114_v32, %v111_v31 }
 0x10b   :  { %v118_v35 = vadd.f32 %v117_v34, %v104_v33 }
 0x10d   :  { %120 = vst.msk [vmem:[%s265_s3] sm:$0xff] %vm119_vm2, %v118_v35 }

</bundles_post_ra>
